<compile_context>
chip_gen: v5e
topology: v5e:2x2
jax: 0.10.0
libtpu: 0.0.40
codegen_flags: <defaults>
</compile_context>

<pallas_src>
import functools

import jax
import jax.numpy as jnp
from jax.experimental import pallas as pl
from jax.experimental.pallas import tpu as pltpu

# --- model hyper-parameters (small, consistent with the module's forward) ---
K = 3                              # number of classes
NUM_ANCHORS = 3                    # anchors per cell
C_IN = 4                           # input image channels (stand-in for RGB=3)
C_FEAT = 32                        # backbone stand-in feature channels
C_OUT = NUM_ANCHORS * (5 + K)      # head output channels = A*(K+5) = 24
                                   # output channel c = a*(K+5) + j


def _detector_kernel(x_ref, w1_ref, b1_ref, w2_ref, b2_ref, o_ref):
    """One (batch image, pixel tile) grid step.

    x_ref  : [1, C_IN, tm]    input pixels, channel-major (channels on sublanes,
                              pixels on lanes -> all compute is lane-dense)
    w1_ref : [C_FEAT, C_IN]   backbone stand-in 1x1 conv weight ([out, in])
    b1_ref : [C_FEAT, 1]
    w2_ref : [C_OUT, C_FEAT]  detection-head 1x1 conv weight ([out, in])
    b2_ref : [C_OUT, 1]
    o_ref  : [1, tm, C_OUT]   activated detections, pixel-major, so the wrapper's
                              final [B, H, W, A, K+5] reshape is a free view.
    """
    x = x_ref[0]                                               # [C_IN, tm]

    # ---- backbone stand-in: pointwise conv + ReLU (MXU) ----
    # Depth-4 contraction: run it on the MXU — the vex slot is nearly idle and
    # the VALU is the contended unit near the HBM roofline.
    feat = jnp.dot(w1_ref[...], x, preferred_element_type=jnp.float32)
    feat = jnp.maximum(feat + b1_ref[...], 0.0)                # [C_FEAT, tm]

    # ---- detection head: nn.Conv2d(kernel_size=1) == channel matmul (MXU) ----
    y = jnp.dot(w2_ref[...], feat, preferred_element_type=jnp.float32)
    y = y + b2_ref[...]                                        # [C_OUT, tm]

    # ---- per-slot activations, channel-major ----
    # sigmoid only on xy-offset + objectness rows, exp only on wh rows, class
    # logits passed through (9 + 6 of 24 rows of EUP work).  The activated
    # slices are assembled with a single sublane concat so the epilogue is one
    # aligned store per tile instead of 12 sublane-masked ones.
    parts = []
    for a in range(NUM_ANCHORS):
        base = a * (K + 5)
        parts.append(y[base:base + K, :])                                # cls
        parts.append(jax.nn.sigmoid(y[base + K:base + K + 2, :]))        # xy
        parts.append(jnp.exp(y[base + K + 2:base + K + 4, :]))           # wh
        parts.append(jax.nn.sigmoid(y[base + K + 4:base + K + 5, :]))    # obj
    act = jnp.concatenate(parts, axis=0)                       # [C_OUT, tm]

    # [C_OUT, tm] -> [tm, C_OUT] on the (idle) XLU so HBM receives the final
    # pixel-major layout directly and the wrapper never re-transposes it.
    o_ref[0] = jnp.transpose(act, (1, 0)).astype(o_ref.dtype)


def _round_up(x, m):
    return ((x + m - 1) // m) * m


def _is_v7x():
    """Only v7x has 2 TensorCores sharding 'parallel' grid axes."""
    try:
        kind = jax.devices()[0].device_kind.lower()
    except Exception:
        return False
    return ("v7" in kind) or ("7x" in kind)


def _pick_tile(hw, batch, *, max_tm=8192):
    """Pixel tile: a multiple of 128 (lane-dense blocks + a tile-friendly
    in-kernel transpose), as large as possible to amortize the ~0.35us fixed
    per-grid-step cost of this mem-bound kernel.  max_tm=8192 keeps the
    worst-case VMEM footprint (the pixel-major [tm, C_OUT] output block is
    lane-padded to 128 in VMEM) around ~15 MiB — safe on every generation;
    16384 is worth sweeping with a larger vmem_limit_bytes.  Only v7x needs a
    minimum number of total grid steps (2 TCs share the 'parallel' axes); on
    v5e/v6e extra grid steps are pure overhead, so no min-grid floor there."""
    tm = max(128, min(_round_up(hw, 128), max_tm))
    if _is_v7x():
        min_steps = 4                              # >=2 required, 4 for balance
        tiles_needed = -(-min_steps // max(batch, 1))
        if batch * (-(-hw // tm)) < min_steps:
            tm = max(128, min(tm, _round_up(-(-hw // tiles_needed), 128)))
    return tm


@functools.partial(jax.jit, static_argnames=("tm", "out_dtype"))
def advanced_object_detector(x_nchw, w1, b1, w2, b2, *, tm=None,
                             out_dtype=jnp.float32):
    """Forward pass.

    x_nchw : [B, C_IN, H, W] float32 (PyTorch NCHW)
    w1     : [C_FEAT, C_IN]   (== squeezed PyTorch Conv2d weight [out, in, 1, 1])
    b1     : [C_FEAT]
    w2     : [C_OUT, C_FEAT]
    b2     : [C_OUT]
    Returns [B, H, W, NUM_ANCHORS, K+5] — identical layout/semantics to the
    PyTorch module's view(B, A, K+5, H, W).permute(0, 3, 4, 1, 2) + activations.

    out_dtype: float32 matches the reference exactly; bfloat16 halves the
    dominant HBM writeback (~43% of total traffic) if downstream tolerates it.
    """
    B, C, H, W = x_nchw.shape
    assert C == C_IN
    hw = H * W

    # NCHW -> [B, C_IN, H*W] is a pure view: no wrapper-side input transpose.
    x_v = x_nchw.reshape(B, C_IN, hw)

    if tm is None:
        tm = _pick_tile(hw, B)
    n_tiles = pl.cdiv(hw, tm)   # last tile may be ragged; OOB lanes are masked
                                # on write and never contaminate valid pixels
                                # (all per-pixel work is lane-independent).

    b1_2d = b1.reshape(C_FEAT, 1)
    b2_2d = b2.reshape(C_OUT, 1)

    out_bytes = B * hw * C_OUT * jnp.dtype(out_dtype).itemsize
    cost = pl.CostEstimate(
        flops=2 * B * hw * (C_IN * C_FEAT + C_FEAT * C_OUT),
        transcendentals=B * hw * NUM_ANCHORS * 5,
        bytes_accessed=4 * (B * hw * C_IN + w1.size + b1.size + w2.size + b2.size)
                       + out_bytes,
    )

    out = pl.pallas_call(
        _detector_kernel,
        out_shape=jax.ShapeDtypeStruct((B, hw, C_OUT), out_dtype),
        grid=(B, n_tiles),
        in_specs=[
            pl.BlockSpec((1, C_IN, tm), lambda b, i: (b, 0, i)),
            pl.BlockSpec((C_FEAT, C_IN), lambda b, i: (0, 0)),
            pl.BlockSpec((C_FEAT, 1), lambda b, i: (0, 0)),
            pl.BlockSpec((C_OUT, C_FEAT), lambda b, i: (0, 0)),
            pl.BlockSpec((C_OUT, 1), lambda b, i: (0, 0)),
        ],
        # NOTE: if profiling shows exposed DMA at large tm, sweep
        # pipeline_mode=pl.Buffered(3) on the x in_spec / out_spec.
        out_specs=pl.BlockSpec((1, tm, C_OUT), lambda b, i: (b, i, 0)),
        compiler_params=pltpu.CompilerParams(
            dimension_semantics=("parallel", "parallel"),
            vmem_limit_bytes=40 * 1024 * 1024,   # < v7x's 64 MiB physical VMEM
        ),
        cost_estimate=cost,
    )(x_v, w1, b1_2d, w2, b2_2d)

    # [B, H*W, 24] -> [B, H, W, A, K+5]: contiguous, a free view — no transpose.
    return out.reshape(B, H, W, NUM_ANCHORS, K + 5)


def _reference(x_nchw, w1, b1, w2, b2):
    """Pure-JAX reference mirroring the PyTorch forward (with the stand-in backbone)."""
    B, C, H, W = x_nchw.shape
    x = jnp.transpose(x_nchw, (0, 2, 3, 1))                  # NHWC
    feat = jnp.maximum(jnp.einsum("bhwc,fc->bhwf", x, w1) + b1, 0.0)
    y = jnp.einsum("bhwf,of->bhwo", feat, w2) + b2           # head (1x1 conv)
    y = y.reshape(B, H, W, NUM_ANCHORS, K + 5)               # == view+permute(0,3,4,1,2)
    box_xy = jax.nn.sigmoid(y[..., K:K + 2])
    box_wh = jnp.exp(y[..., K + 2:K + 4])
    obj = jax.nn.sigmoid(y[..., K + 4:K + 5])
    return jnp.concatenate([y[..., :K], box_xy, box_wh, obj], axis=-1)


if __name__ == "__main__":
    key = jax.random.PRNGKey(0)
    k_x, k_w1, k_b1, k_w2, k_b2 = jax.random.split(key, 5)

    B, H, W = 2, 16, 16
    x = jax.random.normal(k_x, (B, C_IN, H, W), dtype=jnp.float32)

    # deterministic synthetic parameters, [out, in] orientation
    # (== squeezed PyTorch Conv2d weights)
    w1 = jax.random.normal(k_w1, (C_FEAT, C_IN), dtype=jnp.float32) * 0.1
    b1 = jax.random.normal(k_b1, (C_FEAT,), dtype=jnp.float32) * 0.1
    w2 = jax.random.normal(k_w2, (C_OUT, C_FEAT), dtype=jnp.float32) * 0.1
    b2 = jax.random.normal(k_b2, (C_OUT,), dtype=jnp.float32) * 0.1

    out = jax.block_until_ready(advanced_object_detector(x, w1, b1, w2, b2))
    ref = jax.block_until_ready(_reference(x, w1, b1, w2, b2))

    assert out.shape == (B, H, W, NUM_ANCHORS, K + 5), out.shape
    assert jnp.allclose(out, ref, atol=1e-5, rtol=1e-4), "mismatch vs reference"

    print("KERNEL_OK")
</pallas_src>

<mosaic_0001>
module attributes {stable_mosaic.version = 11 : i64} {
  func.func @_detector_kernel(%arg0: i32, %arg1: i32, %arg2: memref<1x4x256xf32, #tpu.memory_space<vmem>>, %arg3: memref<32x4xf32, #tpu.memory_space<vmem>>, %arg4: memref<32x1xf32, #tpu.memory_space<vmem>>, %arg5: memref<24x32xf32, #tpu.memory_space<vmem>>, %arg6: memref<24x1xf32, #tpu.memory_space<vmem>>, %arg7: memref<1x256x24xf32, #tpu.memory_space<vmem>>) attributes {dimension_semantics = [#tpu.dimension_semantics<parallel>, #tpu.dimension_semantics<parallel>], iteration_bounds = array<i64: 2, 1>, scalar_prefetch = 0 : i64, scratch_operands = 0 : i64, tpu.core_type = #tpu.core_type<tc>, window_params = [{transform_indices = @transform_0, window_bounds = array<i64: 1, 4, 256>}, {pipeline_mode = #tpu.pipeline_mode<synchronous>, transform_indices = @transform_1, window_bounds = array<i64: 32, 4>}, {pipeline_mode = #tpu.pipeline_mode<synchronous>, transform_indices = @transform_2, window_bounds = array<i64: 32, 1>}, {pipeline_mode = #tpu.pipeline_mode<synchronous>, transform_indices = @transform_3, window_bounds = array<i64: 24, 32>}, {pipeline_mode = #tpu.pipeline_mode<synchronous>, transform_indices = @transform_4, window_bounds = array<i64: 24, 1>}, {transform_indices = @transform_5, window_bounds = array<i64: 1, 256, 24>}]} {
    %c0 = arith.constant 0 : index
    %c0_0 = arith.constant 0 : index
    %c0_1 = arith.constant 0 : index
    %0 = vector.load %arg2[%c0, %c0_0, %c0_1] : memref<1x4x256xf32, #tpu.memory_space<vmem>>, vector<1x4x256xf32>
    %1 = vector.shape_cast %0 : vector<1x4x256xf32> to vector<4x256xf32>
    %c0_2 = arith.constant 0 : index
    %c0_3 = arith.constant 0 : index
    %2 = vector.load %arg3[%c0_2, %c0_3] : memref<32x4xf32, #tpu.memory_space<vmem>>, vector<32x4xf32>
    %cst = arith.constant dense<0.000000e+00> : vector<32x256xf32>
    %3 = tpu.matmul %2, %1, %cst {dimension_numbers = #tpu.dot_dimension_numbers<[1], [0], [0], [1], [0, 0, 1, 1], [], []>} : vector<32x4xf32>, vector<4x256xf32>, vector<32x256xf32> -> vector<32x256xf32>
    %c0_4 = arith.constant 0 : index
    %c0_5 = arith.constant 0 : index
    %4 = vector.load %arg4[%c0_4, %c0_5] : memref<32x1xf32, #tpu.memory_space<vmem>>, vector<32x1xf32>
    %5 = vector.broadcast %4 : vector<32x1xf32> to vector<32x256xf32>
    %6 = arith.addf %3, %5 : vector<32x256xf32>
    %cst_6 = arith.constant 0.000000e+00 : f32
    %7 = vector.broadcast %cst_6 : f32 to vector<32x256xf32>
    %8 = arith.maximumf %6, %7 : vector<32x256xf32>
    %c0_7 = arith.constant 0 : index
    %c0_8 = arith.constant 0 : index
    %9 = vector.load %arg5[%c0_7, %c0_8] : memref<24x32xf32, #tpu.memory_space<vmem>>, vector<24x32xf32>
    %cst_9 = arith.constant dense<0.000000e+00> : vector<24x256xf32>
    %10 = tpu.matmul %9, %8, %cst_9 {dimension_numbers = #tpu.dot_dimension_numbers<[1], [0], [0], [1], [0, 0, 1, 1], [], []>} : vector<24x32xf32>, vector<32x256xf32>, vector<24x256xf32> -> vector<24x256xf32>
    %c0_10 = arith.constant 0 : index
    %c0_11 = arith.constant 0 : index
    %11 = vector.load %arg6[%c0_10, %c0_11] : memref<24x1xf32, #tpu.memory_space<vmem>>, vector<24x1xf32>
    %12 = vector.broadcast %11 : vector<24x1xf32> to vector<24x256xf32>
    %13 = arith.addf %10, %12 : vector<24x256xf32>
    %14 = vector.extract_strided_slice %13 {offsets = [0, 0], sizes = [3, 256], strides = [1, 1]} : vector<24x256xf32> to vector<3x256xf32>
    %15 = vector.extract_strided_slice %13 {offsets = [3, 0], sizes = [2, 256], strides = [1, 1]} : vector<24x256xf32> to vector<2x256xf32>
    %16 = arith.negf %15 : vector<2x256xf32>
    %17 = math.exp %16 : vector<2x256xf32>
    %cst_12 = arith.constant 1.000000e+00 : f32
    %18 = vector.broadcast %cst_12 : f32 to vector<2x256xf32>
    %19 = arith.addf %18, %17 : vector<2x256xf32>
    %20 = arith.divf %18, %19 : vector<2x256xf32>
    %21 = vector.extract_strided_slice %13 {offsets = [5, 0], sizes = [2, 256], strides = [1, 1]} : vector<24x256xf32> to vector<2x256xf32>
    %22 = math.exp %21 : vector<2x256xf32>
    %23 = vector.extract_strided_slice %13 {offsets = [7, 0], sizes = [1, 256], strides = [1, 1]} : vector<24x256xf32> to vector<1x256xf32>
    %24 = arith.negf %23 : vector<1x256xf32>
    %25 = math.exp %24 : vector<1x256xf32>
    %cst_13 = arith.constant 1.000000e+00 : f32
    %26 = vector.broadcast %cst_13 : f32 to vector<1x256xf32>
    %27 = arith.addf %26, %25 : vector<1x256xf32>
    %28 = arith.divf %26, %27 : vector<1x256xf32>
    %29 = vector.extract_strided_slice %13 {offsets = [8, 0], sizes = [3, 256], strides = [1, 1]} : vector<24x256xf32> to vector<3x256xf32>
    %30 = vector.extract_strided_slice %13 {offsets = [11, 0], sizes = [2, 256], strides = [1, 1]} : vector<24x256xf32> to vector<2x256xf32>
    %31 = arith.negf %30 : vector<2x256xf32>
    %32 = math.exp %31 : vector<2x256xf32>
    %cst_14 = arith.constant 1.000000e+00 : f32
    %33 = vector.broadcast %cst_14 : f32 to vector<2x256xf32>
    %34 = arith.addf %33, %32 : vector<2x256xf32>
    %35 = arith.divf %33, %34 : vector<2x256xf32>
    %36 = vector.extract_strided_slice %13 {offsets = [13, 0], sizes = [2, 256], strides = [1, 1]} : vector<24x256xf32> to vector<2x256xf32>
    %37 = math.exp %36 : vector<2x256xf32>
    %38 = vector.extract_strided_slice %13 {offsets = [15, 0], sizes = [1, 256], strides = [1, 1]} : vector<24x256xf32> to vector<1x256xf32>
    %39 = arith.negf %38 : vector<1x256xf32>
    %40 = math.exp %39 : vector<1x256xf32>
    %cst_15 = arith.constant 1.000000e+00 : f32
    %41 = vector.broadcast %cst_15 : f32 to vector<1x256xf32>
    %42 = arith.addf %41, %40 : vector<1x256xf32>
    %43 = arith.divf %41, %42 : vector<1x256xf32>
    %44 = vector.extract_strided_slice %13 {offsets = [16, 0], sizes = [3, 256], strides = [1, 1]} : vector<24x256xf32> to vector<3x256xf32>
    %45 = vector.extract_strided_slice %13 {offsets = [19, 0], sizes = [2, 256], strides = [1, 1]} : vector<24x256xf32> to vector<2x256xf32>
    %46 = arith.negf %45 : vector<2x256xf32>
    %47 = math.exp %46 : vector<2x256xf32>
    %cst_16 = arith.constant 1.000000e+00 : f32
    %48 = vector.broadcast %cst_16 : f32 to vector<2x256xf32>
    %49 = arith.addf %48, %47 : vector<2x256xf32>
    %50 = arith.divf %48, %49 : vector<2x256xf32>
    %51 = vector.extract_strided_slice %13 {offsets = [21, 0], sizes = [2, 256], strides = [1, 1]} : vector<24x256xf32> to vector<2x256xf32>
    %52 = math.exp %51 : vector<2x256xf32>
    %53 = vector.extract_strided_slice %13 {offsets = [23, 0], sizes = [1, 256], strides = [1, 1]} : vector<24x256xf32> to vector<1x256xf32>
    %54 = arith.negf %53 : vector<1x256xf32>
    %55 = math.exp %54 : vector<1x256xf32>
    %cst_17 = arith.constant 1.000000e+00 : f32
    %56 = vector.broadcast %cst_17 : f32 to vector<1x256xf32>
    %57 = arith.addf %56, %55 : vector<1x256xf32>
    %58 = arith.divf %56, %57 : vector<1x256xf32>
    %59 = tpu.concatenate %14, %20, %22, %28, %29, %35, %37, %43, %44, %50, %52, %58 in 0 : vector<3x256xf32>, vector<2x256xf32>, vector<2x256xf32>, vector<1x256xf32>, vector<3x256xf32>, vector<2x256xf32>, vector<2x256xf32>, vector<1x256xf32>, vector<3x256xf32>, vector<2x256xf32>, vector<2x256xf32>, vector<1x256xf32> -> vector<24x256xf32>
    %60 = tpu.transpose %59, [1, 0] : vector<24x256xf32> -> vector<256x24xf32>
    %c0_18 = arith.constant 0 : index
    %c0_19 = arith.constant 0 : index
    %c0_20 = arith.constant 0 : index
    %61 = vector.load %arg7[%c0_18, %c0_19, %c0_20] : memref<1x256x24xf32, #tpu.memory_space<vmem>>, vector<1x256x24xf32>
    %62 = vector.shape_cast %61 : vector<1x256x24xf32> to vector<256x24xf32>
    %63 = vector.shape_cast %60 : vector<256x24xf32> to vector<1x256x24xf32>
    tpu.vector_store %arg7[%c0_18, %c0_19, %c0_20], %63 {strides = array<i32>} : memref<1x256x24xf32, #tpu.memory_space<vmem>>, vector<1x256x24xf32>,
    return
  }
  func.func @transform_0(%arg0: i32, %arg1: i32) -> (i32, i32, i32) {
    %c0_i32 = arith.constant 0 : i32
    %c0_i32_0 = arith.constant 0 : i32
    return %arg0, %c0_i32, %arg1 : i32, i32, i32
  }
  func.func @transform_1(%arg0: i32, %arg1: i32) -> (i32, i32) {
    %c0_i32 = arith.constant 0 : i32
    %c0_i32_0 = arith.constant 0 : i32
    %c0_i32_1 = arith.constant 0 : i32
    return %c0_i32, %c0_i32_0 : i32, i32
  }
  func.func @transform_2(%arg0: i32, %arg1: i32) -> (i32, i32) {
    %c0_i32 = arith.constant 0 : i32
    %c0_i32_0 = arith.constant 0 : i32
    %c0_i32_1 = arith.constant 0 : i32
    return %c0_i32, %c0_i32_0 : i32, i32
  }
  func.func @transform_3(%arg0: i32, %arg1: i32) -> (i32, i32) {
    %c0_i32 = arith.constant 0 : i32
    %c0_i32_0 = arith.constant 0 : i32
    %c0_i32_1 = arith.constant 0 : i32
    return %c0_i32, %c0_i32_0 : i32, i32
  }
  func.func @transform_4(%arg0: i32, %arg1: i32) -> (i32, i32) {
    %c0_i32 = arith.constant 0 : i32
    %c0_i32_0 = arith.constant 0 : i32
    %c0_i32_1 = arith.constant 0 : i32
    return %c0_i32, %c0_i32_0 : i32, i32
  }
  func.func @transform_5(%arg0: i32, %arg1: i32) -> (i32, i32, i32) {
    %c0_i32 = arith.constant 0 : i32
    %c0_i32_0 = arith.constant 0 : i32
    return %arg0, %arg1, %c0_i32 : i32, i32, i32
  }
}

</mosaic_0001>

<bundles_post_ra>
// kernel: advanced_object_detector.1
= control target key start
LH: loop header
LB: loop body
LE: loop exit
PB: predicated region body
PF: predicated region fallthrough
CT: control target
= control target key end

     0   :  { %s950_s18 = smov 0   ;;  %s952_s19 = smov 0   ;;  %s1223_s0 = inlined_call_operand.vmem [shape: f32[2,4,256], index: 0, kind: input, shape index: {}]   ;;  %s1224_s1 = inlined_call_operand.vmem [shape: f32[32,4], index: 1, kind: input, shape index: {}]   ;;  %s1225_s2 = inlined_call_operand.vmem [shape: f32[32,1], index: 2, kind: input, shape index: {}]   ;;  %s1226_s3 = inlined_call_operand.vmem [shape: f32[24,32], index: 3, kind: input, shape index: {}]   ;;  %s1227_s4 = inlined_call_operand.vmem [shape: f32[24,1], index: 4, kind: input, shape index: {}]   ;;  %s1228_s5 = inlined_call_operand.vmem [shape: f32[2,256,24], index: 5, kind: output, shape index: {}]  }
   0x1   :  { %s954_s20 = smov 0  }
   0x2 LB: > { %s27_s21 = sadd.s32 1, %s913_s19  ;;  %p799_p0 = scmp.ge.s32.totalorder %s917_s20, 1  ;;  %s917_s20 = sphi %s954_s20, %s15_s20   ;;  %s913_s19 = sphi %s952_s19, %s1238_s19   ;;  %s909_s18 = sphi %s950_s18, %s1237_s18  }
   0x3   : > { %p29_p1 = scmp.ge.s32.totalorder %s27_s21, 2  ;;  %p208_p2 = scmp.lt.s32.totalorder %s917_s20, 3 }
   0x5   : > { %s1240_s21 = smov (%p29_p1, %s27_s21), 0  ;;  %p209_p3 = pnand %p799_p0, %p208_p2 }
   0x6   : > { %p245_p4 = scmp.lt.s32.totalorder (!%p209_p3), %s909_s18, 1 }
   0x7   : > { %212 = sbr.rel (%p209_p3) target bundleno = 637 (0x27d), region = 40 }
   0xc   : > { %v270_v0 = vld [vmem:[%s1225_s2 + $0x8] sm:$0xff]  ;;  %v919_v1 = vmov 0   ;;  %v272_v2 = vld [vmem:[%s1225_s2 + $0x18] sm:$0xff]  ;;  %s1242_s18 = smov (!%p245_p4, %s909_s18), 1  ;;  %v269_v4 = vld [vmem:[%s1225_s2] sm:$0xff]  ;;  %vm310_vm0 = vcmask 1043456  }
   0xd   : > { %857 = vset.pattern.permute.xlu1 %v919_v1  ;;  %856 = vset.pattern.permute.xlu0 %v919_v1  ;;  %s828_s26 = sshll.u32 %s1242_s18, 3  ;;  %v271_v5 = vld [vmem:[%s1225_s2 + $0x10] sm:$0xff]  ;;  %v265_v6 = vld [vmem:[%s1224_s1] sm:$0xff]  ;;  %vm297_vm1 = vcmask 31744   ;;  %v266_v10 = vld [vmem:[%s1224_s1 + $0x8] sm:$0xff]  ;;  %vm402_vm2 = vcmask 261120  }
   0xe   : > { %280 = vperm.xlu1 %857, %v270_v0   ;;  %290 = vperm.xlu0 %856, %v272_v2   ;;  %s252_s29 = scalar_lea.vmem %s1223_s0, %s828_s26  ;;  %v386_v9 = vld [vmem:[%s1227_s4 + $0x10] sm:$0xff]  ;;  %v268_v12 = vld [vmem:[%s1224_s1 + $0x18] sm:$0xff]  ;;  %v384_v21 = vld [vmem:[%s1227_s4] sm:$0xff]  ;;  %vm590_vm3 = vcmask 1042432   ;;  %vm593_vm4 = vcmask 1044480   ;;  %vm596_vm7 = vcmask 1046528  }
   0xf   : > { %858 = vset.pattern.permute.xlu2 %v919_v1  ;;  %v264_v3 = vld [vmem:[%s252_s29] sm:$0xff]  ;;  %v267_v11 = vld [vmem:[%s1224_s1 + $0x10] sm:$0xff]  ;;  %v385_v34 = vld [vmem:[%s1227_s4 + $0x8] sm:$0xff]  ;;  %s829_s8 = sshll.u32 %s1242_s18, 8 }
  0x10   : > { %294 = vst [vmem:[#allocation1] ss:$2 sm:$0xff] %v264_v3  ;;  %389 = vperm.xlu2 %858, %v384_v21   ;;  %v381_v43 = vld [vmem:[%s1226_s3] sm:$0xff]  ;;  %v382_v44 = vld [vmem:[%s1226_s3 + $0x8] sm:$0xff]  ;;  %v383_v45 = vld [vmem:[%s1226_s3 + $0x10] sm:$0xff]  ;;  %s1148_s11 = scalar_lea.vmem %s1228_s5, %s829_s8 }
  0x16   : > { %275 = vperm.xlu1 %857, %v269_v4   ;;  %285 = vperm.xlu0 %856, %v271_v5  }
  0x17   : > { %v295_v7 = vld.sshfl [vmem:[#allocation1] sm:$0xff pattern:$0x75316420]  ;;  %v296_v8 = vld.sshfl [vmem:[#allocation1 + $0x8] sm:$0xff pattern:$0x75316420] }
  0x18   : > { %804 = vmatpush.msk.msra.mxu0 %vm310_vm0, %v295_v7  ;;  %809 = vmatpush.msk.msra.mxu1 %vm310_vm0, %v296_v8 }
  0x19   : > { %805 = vmatmul.msk.f32.vlgmr.msra.gmra.mxu0 %vm297_vm1, %v265_v6  ;;  %810 = vmatmul.msk.f32.vlgmr.msra.gmra.mxu1 %vm297_vm1, %v265_v6 }
  0x1a   : > { %394 = vperm.xlu2 %858, %v385_v34  }
  0x1e   : > { %399 = vperm.xlu0 %856, %v386_v9  }
  0x21   : > { %806 = vmatmul.msk.f32.gmra.mxu0 %vm297_vm1, %v266_v10  ;;  %811 = vmatmul.msk.f32.gmra.mxu1 %vm297_vm1, %v266_v10 }
  0x29   : > { %807 = vmatmul.msk.f32.gmra.mxu0 %vm297_vm1, %v267_v11  ;;  %812 = vmatmul.msk.f32.gmra.mxu1 %vm297_vm1, %v267_v11 }
  0x31   : > { %808 = vmatmul.msk.f32.gmra.mxu0 %vm297_vm1, %v268_v12  ;;  %813 = vmatmul.msk.f32.gmra.mxu1 %vm297_vm1, %v268_v12 }
  0x6a   : > { %v390_v46 = vpop.permute.xlu2 %389 }
  0x74   : > { %v395_v53 = vpop.permute.xlu2 %394 }
  0x80   : > { %v291_v17 = vpop.permute.xlu0 %290  ;;  %v281_v18 = vpop.permute.xlu1 %280 }
  0x88   : > { %v286_v22 = vpop.permute.xlu0 %285  ;;  %v276_v29 = vpop.permute.xlu1 %275 }
  0x90   : > { %v400_v0 = vpop.permute.xlu0 %399 }
  0x96   : > { %v332_v13 = vpop.f32.mrf.mxu0  ;;  %v361_v14 = vpop.f32.mrf.mxu1 }
  0x97   : > { %v333_v35 = vadd.f32 %v332_v13, %v276_v29  ;;  %v362_v36 = vadd.f32 %v361_v14, %v276_v29 }
  0x99   : > { %v373_v41 = vmax.f32 %v333_v35, 0.0  ;;  %v374_v42 = vmax.f32 %v362_v36, 0.0 }
  0x9e   : > { %v335_v15 = vpop.f32.mrf.mxu0  ;;  %v364_v16 = vpop.f32.mrf.mxu1 }
  0x9f   : > { %v336_v30 = vadd.f32 %v335_v15, %v281_v18  ;;  %v365_v31 = vadd.f32 %v364_v16, %v281_v18 }
  0xa1   : > { %v375_v39 = vmax.f32 %v336_v30, 0.0  ;;  %v376_v40 = vmax.f32 %v365_v31, 0.0 }
  0xa6   : > { %v338_v19 = vpop.f32.mrf.mxu0  ;;  %v367_v20 = vpop.f32.mrf.mxu1 }
  0xa7   : > { %v339_v25 = vadd.f32 %v338_v19, %v286_v22  ;;  %v368_v26 = vadd.f32 %v367_v20, %v286_v22 }
  0xa9   : > { %v377_v37 = vmax.f32 %v339_v25, 0.0  ;;  %v378_v38 = vmax.f32 %v368_v26, 0.0 }
  0xae   : > { %v341_v23 = vpop.f32.mrf.mxu0  ;;  %v370_v24 = vpop.f32.mrf.mxu1 }
  0xaf   : > { %v342_v27 = vadd.f32 %v341_v23, %v291_v17  ;;  %v371_v28 = vadd.f32 %v370_v24, %v291_v17 }
  0xb1   : > { %v379_v32 = vmax.f32 %v342_v27, 0.0  ;;  %v380_v33 = vmax.f32 %v371_v28, 0.0 }
  0xb3   : > { %424 = vmatpush.msra.mxu2 %v379_v32  ;;  %450 = vmatpush.msra.mxu3 %v380_v33 }
  0xb5   : > { %425 = vmatpush.msra.mxu2 %v377_v37  ;;  %451 = vmatpush.msra.mxu3 %v378_v38 }
  0xb7   : > { %426 = vmatpush.msra.mxu2 %v375_v39  ;;  %452 = vmatpush.msra.mxu3 %v376_v40 }
  0xb9   : > { %427 = vmatpush.msra.mxu2 %v373_v41  ;;  %453 = vmatpush.msra.mxu3 %v374_v42 }
  0xba   : > { %814 = vmatmul.msk.f32.vlgmr.msra.gmra.mxu2 %vm402_vm2, %v381_v43  ;;  %817 = vmatmul.msk.f32.vlgmr.msra.gmra.mxu3 %vm402_vm2, %v381_v43 }
  0xc2   : > { %815 = vmatmul.msk.f32.gmra.mxu2 %vm402_vm2, %v382_v44  ;;  %818 = vmatmul.msk.f32.gmra.mxu3 %vm402_vm2, %v382_v44 }
  0xca   : > { %816 = vmatmul.msk.f32.gmra.mxu2 %vm402_vm2, %v383_v45  ;;  %819 = vmatmul.msk.f32.gmra.mxu3 %vm402_vm2, %v383_v45 }
 0x13d   : > { %v429_v47 = vpop.f32.mrf.mxu2  ;;  %v455_v48 = vpop.f32.mrf.mxu3 }
 0x13e   : > { %v1024_v49 = vadd.f32 %v429_v47, %v390_v46  ;;  %v1026_v50 = vadd.f32 %v455_v48, %v390_v46 }
 0x140   : > { %v820_v51 = vmul.f32 -1.442695, %v1024_v49  ;;  %v821_v52 = vmul.f32 -1.442695, %v1026_v50  ;;  %v502_v1 = vmul.f32 1.442695, %v1024_v49 }
 0x141   : > { %v504_v2 = vmul.f32 1.442695, %v1026_v50 }
 0x142   : > { %859 = vpow2.f32 %v820_v51 }
 0x143   : > { %861 = vpow2.f32 %v821_v52 }
 0x145   : > { %v432_v54 = vpop.f32.mrf.mxu2  ;;  %v458_v55 = vpop.f32.mrf.mxu3 }
 0x146   : > { %v1030_v56 = vadd.f32 %v432_v54, %v395_v53  ;;  %v1032_v57 = vadd.f32 %v458_v55, %v395_v53 }
 0x148   : > { %v860_v58 = vpop.eup %859  ;;  %v822_v59 = vmul.f32 -1.442695, %v1030_v56  ;;  %v823_v62 = vmul.f32 -1.442695, %v1032_v57  ;;  %v544_v8 = vmul.f32 1.442695, %v1030_v56 }
 0x149   : > { %v1035_v60 = vadd.f32 1.0, %v860_v58  ;;  %v862_v61 = vpop.eup %861  ;;  %v546_v15 = vmul.f32 1.442695, %v1032_v57 }
 0x14a   : > { %863 = vpow2.f32 %v822_v59  ;;  %v1039_v63 = vadd.f32 1.0, %v862_v61 }
 0x14b   : > { %865 = vrcp.f32 %v1035_v60  ;;  %v481_v19 = vand.u32 2147483647, %v1035_v60  ;;  %v483_v26 = vand.u32 2147483648, %v1035_v60  ;;  %vm477_vm8 = vweird.f32 %v1035_v60 }
 0x14c   : > { %867 = vrcp.f32 %v1039_v63  ;;  %v496_v21 = vand.u32 2147483647, %v1039_v63  ;;  %v498_v22 = vand.u32 2147483648, %v1039_v63  ;;  %vm492_vm6 = vweird.f32 %v1039_v63 }
 0x14d   : > { %v435_v3 = vpop.f32.mrf.mxu2  ;;  %v461_v4 = vpop.f32.mrf.mxu3  ;;  %869 = vpow2.f32 %v823_v62  ;;  %vm1066_vm10 = vcmp.eq.f32.partialorder %v481_v19, 8.507059e+37  ;;  %v484_v41 = vor.u32 1.1754944e-38, %v483_v26 }
 0x14e   : > { %v1044_v5 = vadd.f32 %v435_v3, %v400_v0  ;;  %v1046_v6 = vadd.f32 %v461_v4, %v400_v0  ;;  %871 = vpow2.f32 %v502_v1  ;;  %vm1072_vm11 = vcmp.eq.f32.partialorder %v496_v21, 8.507059e+37 }
 0x14f   : > { %873 = vpow2.f32 %v504_v2  ;;  %v499_v35 = vor.u32 1.1754944e-38, %v498_v22 }
 0x150   : > { %v864_v7 = vpop.eup %863  ;;  %v824_v9 = vmul.f32 -1.442695, %v1044_v5  ;;  %v825_v12 = vmul.f32 -1.442695, %v1046_v6  ;;  %v586_v45 = vmul.f32 1.442695, %v1044_v5 }
 0x151   : > { %v866_v10 = vpop.eup %865  ;;  %v1050_v11 = vadd.f32 1.0, %v864_v7  ;;  %v588_v53 = vmul.f32 1.442695, %v1046_v6 }
 0x152   : > { %875 = vpow2.f32 %v824_v9  ;;  %v473_v13 = vmul.f32 %v866_v10, %v1035_v60  ;;  %v868_v14 = vpop.eup %867  ;;  %vm478_vm5 = vweird.f32 %v866_v10 }
 0x153   : > { %877 = vrcp.f32 %v1050_v11  ;;  %v870_v16 = vpop.eup %869  ;;  %v488_v17 = vmul.f32 %v868_v14, %v1039_v63  ;;  %vm493_vm9 = vweird.f32 %v868_v14  ;;  %vm1077_vm12 = vmor %vm477_vm8, %vm478_vm5  ;;  %v523_v43 = vand.u32 2147483647, %v1050_v11 }
 0x154   : > { %879 = vpow2.f32 %v544_v8  ;;  %v474_v18 = vsub.f32 1.0, %v473_v13  ;;  %v1058_v20 = vadd.f32 1.0, %v870_v16  ;;  %v872_v23 = vpop.eup %871  ;;  %v525_v44 = vand.u32 2147483648, %v1050_v11  ;;  %vm494_vm13 = vmor %vm492_vm6, %vm493_vm9 }
 0x155   : > { %881 = vpow2.f32 %v825_v12  ;;  %v489_v24 = vsub.f32 1.0, %v488_v17  ;;  %v874_v27 = vpop.eup %873  ;;  %vm519_vm14 = vweird.f32 %v1050_v11  ;;  %vm1103_vm0 = vcmp.eq.f32.partialorder %v523_v43, 8.507059e+37 }
 0x156   : > { %v475_v25 = vmul.f32 %v866_v10, %v474_v18  ;;  %883 = vrcp.f32 %v1058_v20  ;;  %v526_v62 = vor.u32 1.1754944e-38, %v525_v44  ;;  %v538_v4 = vand.u32 2147483647, %v1058_v20 }
 0x157   : > { %v490_v29 = vmul.f32 %v868_v14, %v489_v24  ;;  %885 = vpow2.f32 %v546_v15  ;;  %v540_v7 = vand.u32 2147483648, %v1058_v20  ;;  %vm534_vm5 = vweird.f32 %v1058_v20 }
 0x158   : > { %v876_v28 = vpop.eup %875  ;;  %v476_v30 = vadd.f32 %v866_v10, %v475_v25  ;;  %vm539_vm8 = vcmp.eq.f32.partialorder %v538_v4, 8.507059e+37 }
 0x159   : > { %v878_v32 = vpop.eup %877  ;;  %v1070_v33 = vadd.f32 1.0, %v876_v28  ;;  %v491_v39 = vadd.f32 %v868_v14, %v490_v29  ;;  %v541_v19 = vor.u32 1.1754944e-38, %v540_v7 }
 0x15a   : > { %v880_v37 = vpop.eup %879  ;;  %v515_v38 = vmul.f32 %v878_v32, %v1050_v11  ;;  %v480_v40 = vsel %vm1077_vm12, %v866_v10, %v476_v30  ;;  %vm520_vm15 = vweird.f32 %v878_v32 }
 0x15b   : > { %v882_v42 = vpop.eup %881  ;;  %887 = vrcp.f32 %v1070_v33  ;;  %v495_v48 = vsel %vm494_vm13, %v868_v14, %v491_v39  ;;  %v485_v51 = vsel %vm1066_vm10, %v484_v41, %v480_v40  ;;  %vm521_vm1 = vmor %vm519_vm14, %vm520_vm15  ;;  %v567_v17 = vand.u32 2147483648, %v1070_v33 }
 0x15c   : > { %v516_v46 = vsub.f32 1.0, %v515_v38  ;;  %v1091_v47 = vadd.f32 1.0, %v882_v42  ;;  %v884_v52 = vpop.eup %883  ;;  %v500_v54 = vsel %vm1072_vm11, %v499_v35, %v495_v48  ;;  %v591_v55 = vsel %vm590_vm3, %v1024_v49, %v485_v51 }
 0x15d   : > { %v530_v59 = vmul.f32 %v884_v52, %v1058_v20  ;;  %v886_v60 = vpop.eup %885  ;;  %v592_v63 = vsel %vm590_vm3, %v1026_v50, %v500_v54  ;;  %v594_v2 = vsel %vm593_vm4, %v591_v55, %v872_v23  ;;  %vm535_vm2 = vweird.f32 %v884_v52 }
 0x15e   : > { %v517_v58 = vmul.f32 %v878_v32, %v516_v46  ;;  %889 = vrcp.f32 %v1091_v47  ;;  %v595_v49 = vsel %vm593_vm4, %v592_v63, %v874_v27  ;;  %v597_v9 = vsel %vm596_vm7, %v594_v2, %v485_v51  ;;  %vm536_vm6 = vmor %vm534_vm5, %vm535_vm2 }
 0x15f   : > { %891 = vpow2.f32 %v586_v45  ;;  %v531_v1 = vsub.f32 1.0, %v530_v59  ;;  %v598_v8 = vsel %vm596_vm7, %v595_v49, %v500_v54  ;;  %611 = vxpose.xlu1.b32.start [1/3] (short) %v597_v9, 128  ;;  %v565_v20 = vand.u32 2147483647, %v1070_v33 }
 0x160   : > { %v518_v0 = vadd.f32 %v878_v32, %v517_v58  ;;  %643 = vxpose.xlu2.b32.start [1/3] (short) %v598_v8, 128  ;;  %893 = vpow2.f32 %v588_v53  ;;  %vm561_vm10 = vweird.f32 %v1070_v33  ;;  %v568_v29 = vor.u32 1.1754944e-38, %v567_v17 }
 0x161   : > { %v888_v3 = vpop.eup %887  ;;  %v532_v50 = vmul.f32 %v884_v52, %v531_v1  ;;  %v582_v30 = vand.u32 2147483648, %v1091_v47  ;;  %v580_v34 = vand.u32 2147483647, %v1091_v47  ;;  %vm566_vm13 = vcmp.eq.f32.partialorder %v565_v20, 8.507059e+37 }
 0x162   : > { %v522_v10 = vsel %vm521_vm1, %v878_v32, %v518_v0  ;;  %v557_v12 = vmul.f32 %v888_v3, %v1070_v33  ;;  %vm562_vm9 = vweird.f32 %v888_v3  ;;  %vm576_vm14 = vweird.f32 %v1091_v47 }
 0x163   : > { %v527_v13 = vsel %vm1103_vm0, %v526_v62, %v522_v10  ;;  %v533_v15 = vadd.f32 %v884_v52, %v532_v50  ;;  %vm563_vm11 = vmor %vm561_vm10, %vm562_vm9  ;;  %v583_v39 = vor.u32 1.1754944e-38, %v582_v30  ;;  %vm581_vm0 = vcmp.eq.f32.partialorder %v580_v34, 8.507059e+37 }
 0x164   : > { %v890_v11 = vpop.eup %889  ;;  %v599_v14 = vsel %vm590_vm3, %v1030_v56, %v527_v13  ;;  %v558_v16 = vsub.f32 1.0, %v557_v12 }
 0x165   : > { %v892_v18 = vpop.eup %891  ;;  %v572_v21 = vmul.f32 %v890_v11, %v1091_v47  ;;  %v601_v22 = vsel %vm593_vm4, %v599_v14, %v880_v37  ;;  %v537_v23 = vsel %vm536_vm6, %v884_v52, %v533_v15  ;;  %vm577_vm12 = vweird.f32 %v890_v11 }
 0x166   : > { %v559_v24 = vmul.f32 %v888_v3, %v558_v16  ;;  %v542_v25 = vsel %vm539_vm8, %v541_v19, %v537_v23  ;;  %v603_v26 = vsel %vm596_vm7, %v601_v22, %v527_v13  ;;  %v894_v31 = vpop.eup %893  ;;  %vm578_vm15 = vmor %vm576_vm14, %vm577_vm12 }
 0x167   : > { %v573_v56 = vsub.f32 1.0, %v572_v21  ;;  %v600_v27 = vsel %vm590_vm3, %v1032_v57, %v542_v25  ;;  %612 = vxpose.xlu1.b32.cont [2/3] (short) %v603_v26, 128 }
 0x168   : > { %v560_v28 = vadd.f32 %v888_v3, %v559_v24  ;;  %v602_v35 = vsel %vm593_vm4, %v600_v27, %v886_v60 }
 0x169   : > { %v574_v32 = vmul.f32 %v890_v11, %v573_v56  ;;  %v604_v33 = vsel %vm596_vm7, %v602_v35, %v542_v25 }
 0x16a   : > { %v564_v36 = vsel %vm563_vm11, %v888_v3, %v560_v28  ;;  %644 = vxpose.xlu2.b32.cont [2/3] (short) %v604_v33, 128 }
 0x16b   : > { %v569_v37 = vsel %vm566_vm13, %v568_v29, %v564_v36  ;;  %v575_v38 = vadd.f32 %v890_v11, %v574_v32 }
 0x16c   : > { %v605_v57 = vsel %vm590_vm3, %v1044_v5, %v569_v37 }
 0x16d   : > { %v579_v40 = vsel %vm578_vm15, %v890_v11, %v575_v38  ;;  %v607_v41 = vsel %vm593_vm4, %v605_v57, %v892_v18 }
 0x16e   : > { %v584_v42 = vsel %vm581_vm0, %v583_v39, %v579_v40  ;;  %v609_v44 = vsel %vm596_vm7, %v607_v41, %v569_v37 }
 0x16f   : > { %v606_v43 = vsel %vm590_vm3, %v1046_v6, %v584_v42  ;;  %613 = vxpose.xlu1.b32.end [3/3] (short) %v609_v44, 128  ;;  %vm675_vm3 = vcmask 195584  }
 0x170   : > { %v608_v45 = vsel %vm593_vm4, %v606_v43, %v894_v31 }
 0x171   : > { %v610_v46 = vsel %vm596_vm7, %v608_v45, %v584_v42 }
 0x172   : > { %645 = vxpose.xlu2.b32.end [3/3] (short) %v610_v46, 128 }
 0x1fb   : > { %v659_v5 = vpop.trf.xlu2 }
 0x1fc   : > { %692 = vst.msk [vmem:[%s1148_s11 + $0x80] sm:$0xff] %vm675_vm3, %v659_v5 }
 0x203   : > { %v660_v6 = vpop.trf.xlu2  ;;  %v627_v47 = vpop.trf.xlu1 }
 0x204   : > { %693 = vst.msk [vmem:[%s1148_s11 + $0x88] sm:$0xff] %vm675_vm3, %v660_v6 }
 0x205   : > { %676 = vst.msk [vmem:[%s1148_s11] sm:$0xff] %vm675_vm3, %v627_v47 }
 0x20b   : > { %v661_v48 = vpop.trf.xlu2  ;;  %v628_v51 = vpop.trf.xlu1 }
 0x20c   : > { %694 = vst.msk [vmem:[%s1148_s11 + $0x90] sm:$0xff] %vm675_vm3, %v661_v48 }
 0x20d   : > { %677 = vst.msk [vmem:[%s1148_s11 + $0x8] sm:$0xff] %vm675_vm3, %v628_v51 }
 0x213   : > { %v662_v52 = vpop.trf.xlu2  ;;  %v629_v53 = vpop.trf.xlu1 }
 0x214   : > { %695 = vst.msk [vmem:[%s1148_s11 + $0x98] sm:$0xff] %vm675_vm3, %v662_v52 }
 0x215   : > { %678 = vst.msk [vmem:[%s1148_s11 + $0x10] sm:$0xff] %vm675_vm3, %v629_v53 }
 0x21b   : > { %v663_v54 = vpop.trf.xlu2  ;;  %v630_v55 = vpop.trf.xlu1 }
 0x21c   : > { %696 = vst.msk [vmem:[%s1148_s11 + $0xa0] sm:$0xff] %vm675_vm3, %v663_v54 }
 0x21d   : > { %679 = vst.msk [vmem:[%s1148_s11 + $0x18] sm:$0xff] %vm675_vm3, %v630_v55 }
 0x223   : > { %v664_v58 = vpop.trf.xlu2  ;;  %v631_v59 = vpop.trf.xlu1 }
 0x224   : > { %697 = vst.msk [vmem:[%s1148_s11 + $0xa8] sm:$0xff] %vm675_vm3, %v664_v58 }
 0x225   : > { %680 = vst.msk [vmem:[%s1148_s11 + $0x20] sm:$0xff] %vm675_vm3, %v631_v59 }
 0x22b   : > { %v665_v60 = vpop.trf.xlu2  ;;  %v632_v61 = vpop.trf.xlu1 }
 0x22c   : > { %698 = vst.msk [vmem:[%s1148_s11 + $0xb0] sm:$0xff] %vm675_vm3, %v665_v60 }
 0x22d   : > { %681 = vst.msk [vmem:[%s1148_s11 + $0x28] sm:$0xff] %vm675_vm3, %v632_v61 }
 0x233   : > { %v666_v62 = vpop.trf.xlu2  ;;  %v633_v63 = vpop.trf.xlu1 }
 0x234   : > { %699 = vst.msk [vmem:[%s1148_s11 + $0xb8] sm:$0xff] %vm675_vm3, %v666_v62 }
 0x235   : > { %682 = vst.msk [vmem:[%s1148_s11 + $0x30] sm:$0xff] %vm675_vm3, %v633_v63 }
 0x23b   : > { %v667_v0 = vpop.trf.xlu2  ;;  %v634_v1 = vpop.trf.xlu1 }
 0x23c   : > { %700 = vst.msk [vmem:[%s1148_s11 + $0xc0] sm:$0xff] %vm675_vm3, %v667_v0 }
 0x23d   : > { %683 = vst.msk [vmem:[%s1148_s11 + $0x38] sm:$0xff] %vm675_vm3, %v634_v1 }
 0x243   : > { %v668_v49 = vpop.trf.xlu2  ;;  %v635_v2 = vpop.trf.xlu1 }
 0x244   : > { %701 = vst.msk [vmem:[%s1148_s11 + $0xc8] sm:$0xff] %vm675_vm3, %v668_v49 }
 0x245   : > { %684 = vst.msk [vmem:[%s1148_s11 + $0x40] sm:$0xff] %vm675_vm3, %v635_v2 }
 0x24b   : > { %v669_v3 = vpop.trf.xlu2  ;;  %v636_v4 = vpop.trf.xlu1 }
 0x24c   : > { %702 = vst.msk [vmem:[%s1148_s11 + $0xd0] sm:$0xff] %vm675_vm3, %v669_v3 }
 0x24d   : > { %685 = vst.msk [vmem:[%s1148_s11 + $0x48] sm:$0xff] %vm675_vm3, %v636_v4 }
 0x253   : > { %v670_v7 = vpop.trf.xlu2  ;;  %v637_v8 = vpop.trf.xlu1 }
 0x254   : > { %703 = vst.msk [vmem:[%s1148_s11 + $0xd8] sm:$0xff] %vm675_vm3, %v670_v7 }
 0x255   : > { %686 = vst.msk [vmem:[%s1148_s11 + $0x50] sm:$0xff] %vm675_vm3, %v637_v8 }
 0x25b   : > { %v671_v9 = vpop.trf.xlu2  ;;  %v638_v10 = vpop.trf.xlu1 }
 0x25c   : > { %704 = vst.msk [vmem:[%s1148_s11 + $0xe0] sm:$0xff] %vm675_vm3, %v671_v9 }
 0x25d   : > { %687 = vst.msk [vmem:[%s1148_s11 + $0x58] sm:$0xff] %vm675_vm3, %v638_v10 }
 0x263   : > { %v672_v50 = vpop.trf.xlu2  ;;  %v639_v12 = vpop.trf.xlu1 }
 0x264   : > { %705 = vst.msk [vmem:[%s1148_s11 + $0xe8] sm:$0xff] %vm675_vm3, %v672_v50 }
 0x265   : > { %688 = vst.msk [vmem:[%s1148_s11 + $0x60] sm:$0xff] %vm675_vm3, %v639_v12 }
 0x26b   : > { %v673_v13 = vpop.trf.xlu2  ;;  %v640_v11 = vpop.trf.xlu1 }
 0x26c   : > { %706 = vst.msk [vmem:[%s1148_s11 + $0xf0] sm:$0xff] %vm675_vm3, %v673_v13 }
 0x26d   : > { %689 = vst.msk [vmem:[%s1148_s11 + $0x68] sm:$0xff] %vm675_vm3, %v640_v11 }
 0x273   : > { %v674_v14 = vpop.trf.xlu2  ;;  %v641_v15 = vpop.trf.xlu1 }
 0x274   : > { %707 = vst.msk [vmem:[%s1148_s11 + $0xf8] sm:$0xff] %vm675_vm3, %v674_v14 }
 0x275   : > { %690 = vst.msk [vmem:[%s1148_s11 + $0x70] sm:$0xff] %vm675_vm3, %v641_v15 }
 0x27b   : > { %v642_v16 = vpop.trf.xlu1 }
 0x27c   : > { %691 = vst.msk [vmem:[%s1148_s11 + $0x78] sm:$0xff] %vm675_vm3, %v642_v16 }
 0x27d PF: > { %s15_s20 = sadd.s32 1, %s917_s20   ;;  %s1237_s18 = smov %s913_s19 }
 0x27e   : > { %p12_p5 = scmp.ge.s32.totalorder %s15_s20, 4   ;;  %s1238_s19 = smov %s1240_s21 }
 0x280   :  { %14 = sbr.rel (!%p12_p5) target bundleno = 2 (0x2), region = 70 }

</bundles_post_ra>
